<compile_context>
chip_gen: v7x
topology: tpu7x:2x2x1
jax: 0.10.0
libtpu: 0.0.40
codegen_flags: <defaults>
</compile_context>

<pallas_src>
import functools

import jax
import jax.numpy as jnp
from jax.experimental import pallas as pl
from jax.experimental.pallas import tpu as pltpu


def _gcn_kernel(gso_ref, x_ref, w_ref, b_ref, o_ref, *, num_operators, tile_n):
    # gso_ref: (1, K, tn, N)  bf16      x_ref: (1, N, F_in) bf16
    # w_ref:   (K, F_in, F_out_p) f32   b_ref: (1, F_out_p) f32
    # o_ref:   (1, tn, F_out_p)  f32
    K = num_operators
    n_cols = gso_ref.shape[-1]

    # Collapse (1, K, tn, N) -> (K*tn, N): leading-dim merge only (layout-safe),
    # so all K operators are pushed through the MXU in a single large matmul.
    g = gso_ref[...].reshape(K * tile_n, n_cols)          # (K*tn, N) bf16
    x = x_ref[0]                                          # (N, F_in) bf16
    gx = jnp.dot(g, x, preferred_element_type=jnp.float32)  # (K*tn, F_in) f32

    f_out_p = o_ref.shape[-1]
    acc = jnp.zeros((tile_n, f_out_p), dtype=jnp.float32)
    # Second contraction has tiny inner dims (F_in x F_out); K static row
    # slices + dots here avoid an in-kernel cross-lane relayout of gx.
    for k in range(K):                                    # static, small K
        acc += jnp.dot(gx[k * tile_n:(k + 1) * tile_n], w_ref[k],
                       preferred_element_type=jnp.float32)

    acc += b_ref[0]                                       # bias broadcast over rows
    o_ref[0] = jnp.maximum(acc, 0.0).astype(o_ref.dtype)  # relu, lane-dense store


def gcn_layer_forward(x, gso, filter_taps, bias, *, tile_n=None):
    """x: (B, N, F_in), gso: (B, K, N, N), filter_taps: (K, F_in, F_out),
    bias: (F_out,) -> out: (B, N, F_out)  (float32)."""
    B, N, F_in = x.shape
    K = gso.shape[1]
    F_out = filter_taps.shape[-1]
    F_out_p = pl.cdiv(F_out, 128) * 128          # lane-dense output width

    # Row tile of N: keeps the per-step gso DMA bounded (VMEM budget holds on
    # v7x's 64 MiB as well as v5e/v6e) and gives a second parallel grid axis.
    if tile_n is None:
        tile_n = N if N <= 256 else 256
    assert N % tile_n == 0  # TODO(synk): handle ragged final row tile.
    num_row_tiles = N // tile_n

    # bf16 the HBM-dominant streaming operands; accumulate in f32 on the MXU.
    gso_b = gso.astype(jnp.bfloat16)
    x_b = x.astype(jnp.bfloat16)

    # Pad weights / bias along F_out so the kernel's output block is >=128
    # lanes wide (unmasked stores); padding columns are zero.
    w_p = jnp.zeros((K, F_in, F_out_p), jnp.float32)
    w_p = w_p.at[:, :, :F_out].set(filter_taps.astype(jnp.float32))
    b_p = jnp.zeros((1, F_out_p), jnp.float32)
    b_p = b_p.at[0, :F_out].set(bias.astype(jnp.float32))

    kernel = functools.partial(_gcn_kernel, num_operators=K, tile_n=tile_n)

    out_p = pl.pallas_call(
        kernel,
        out_shape=jax.ShapeDtypeStruct((B, N, F_out_p), jnp.float32),
        grid_spec=pltpu.PrefetchScalarGridSpec(
            num_scalar_prefetch=0,
            grid=(B, num_row_tiles),
            in_specs=[
                pl.BlockSpec((1, K, tile_n, N), lambda b, r: (b, 0, r, 0)),
                pl.BlockSpec((1, N, F_in), lambda b, r: (b, 0, 0)),
                pl.BlockSpec((K, F_in, F_out_p), lambda b, r: (0, 0, 0)),
                pl.BlockSpec((1, F_out_p), lambda b, r: (0, 0)),
            ],
            out_specs=pl.BlockSpec((1, tile_n, F_out_p), lambda b, r: (b, r, 0)),
        ),
        compiler_params=pltpu.CompilerParams(
            # Both axes independent -> both TensorCores get work on v7x.
            dimension_semantics=("parallel", "parallel"),
            vmem_limit_bytes=32 * 1024 * 1024,
        ),
    )(gso_b, x_b, w_p, b_p)

    return out_p[:, :, :F_out]


def gcn_layer_reference(x, gso, filter_taps, bias):
    # Pure-JAX reference matching the PyTorch forward:
    #   mmchain(gso, x[..., None, :, :], W).sum(-3) + bias, then relu.
    gx = jnp.einsum("bknm,bmi->bkni", gso, x, precision="highest")
    out = jnp.einsum("bkni,kio->bkno", gx, filter_taps,
                     precision="highest").sum(axis=-3) + bias
    return jax.nn.relu(out)


if __name__ == "__main__":
    # Small shapes consistent with the module's forward.
    B, N = 2, 16
    F_in, F_out = 8, 16
    K = 3  # num_operators

    key = jax.random.PRNGKey(0)
    kx, kg, kw = jax.random.split(key, 3)

    x = jax.random.normal(kx, (B, N, F_in), dtype=jnp.float32)
    gso = jax.random.normal(kg, (B, K, N, N), dtype=jnp.float32)

    # Deterministic parameter init matching __init__ ('normal', biasinit=0):
    #   filter_taps = randn(K, F_in, F_out) / sqrt(F_in + F_out)
    #   bias        = ones(F_out) * 0
    filter_taps = jax.random.normal(kw, (K, F_in, F_out), dtype=jnp.float32) \
        / jnp.sqrt(jnp.float32(F_in + F_out))
    bias = jnp.zeros((F_out,), dtype=jnp.float32)

    out = gcn_layer_forward(x, gso, filter_taps, bias)
    out = jax.block_until_ready(out)
    assert out.shape == (B, N, F_out)

    # Reference on the same bf16-quantized streaming inputs (the kernel casts
    # gso/x to bf16 and accumulates in f32), so tolerances stay tight.
    x_q = x.astype(jnp.bfloat16).astype(jnp.float32)
    gso_q = gso.astype(jnp.bfloat16).astype(jnp.float32)
    ref = gcn_layer_reference(x_q, gso_q, filter_taps, bias)
    assert jnp.allclose(out, ref, atol=5e-3, rtol=5e-3)

    print("KERNEL_OK")
</pallas_src>

<mosaic_0001>
module attributes {stable_mosaic.version = 11 : i64} {
  func.func @_gcn_kernel(%arg0: i32, %arg1: i32, %arg2: memref<1x3x16x16xbf16, #tpu.memory_space<vmem>>, %arg3: memref<1x16x8xbf16, #tpu.memory_space<vmem>>, %arg4: memref<3x8x128xf32, #tpu.memory_space<vmem>>, %arg5: memref<1x128xf32, #tpu.memory_space<vmem>>, %arg6: memref<1x16x128xf32, #tpu.memory_space<vmem>>) attributes {dimension_semantics = [#tpu.dimension_semantics<parallel>, #tpu.dimension_semantics<parallel>], iteration_bounds = array<i64: 2, 1>, scalar_prefetch = 0 : i64, scratch_operands = 0 : i64, tpu.core_type = #tpu.core_type<tc>, window_params = [{transform_indices = @transform_0, window_bounds = array<i64: 1, 3, 16, 16>}, {transform_indices = @transform_1, window_bounds = array<i64: 1, 16, 8>}, {pipeline_mode = #tpu.pipeline_mode<synchronous>, transform_indices = @transform_2, window_bounds = array<i64: 3, 8, 128>}, {pipeline_mode = #tpu.pipeline_mode<synchronous>, transform_indices = @transform_3, window_bounds = array<i64: 1, 128>}, {transform_indices = @transform_4, window_bounds = array<i64: 1, 16, 128>}]} {
    %c0 = arith.constant 0 : index
    %c0_0 = arith.constant 0 : index
    %c0_1 = arith.constant 0 : index
    %c0_2 = arith.constant 0 : index
    %0 = vector.load %arg2[%c0, %c0_0, %c0_1, %c0_2] : memref<1x3x16x16xbf16, #tpu.memory_space<vmem>>, vector<1x3x16x16xbf16>
    %1 = vector.shape_cast %0 : vector<1x3x16x16xbf16> to vector<48x16xbf16>
    %c0_3 = arith.constant 0 : index
    %c0_4 = arith.constant 0 : index
    %c0_5 = arith.constant 0 : index
    %2 = vector.load %arg3[%c0_3, %c0_4, %c0_5] : memref<1x16x8xbf16, #tpu.memory_space<vmem>>, vector<1x16x8xbf16>
    %3 = vector.shape_cast %2 : vector<1x16x8xbf16> to vector<16x8xbf16>
    %cst = arith.constant dense<0.000000e+00> : vector<48x8xf32>
    %4 = tpu.matmul %1, %3, %cst {dimension_numbers = #tpu.dot_dimension_numbers<[1], [0], [0], [1], [0, 0, 1, 1], [], []>} : vector<48x16xbf16>, vector<16x8xbf16>, vector<48x8xf32> -> vector<48x8xf32>
    %cst_6 = arith.constant 0.000000e+00 : f32
    %5 = vector.broadcast %cst_6 : f32 to vector<16x128xf32>
    %6 = vector.extract_strided_slice %4 {offsets = [0, 0], sizes = [16, 8], strides = [1, 1]} : vector<48x8xf32> to vector<16x8xf32>
    %c0_7 = arith.constant 0 : index
    %c0_8 = arith.constant 0 : index
    %c0_9 = arith.constant 0 : index
    %7 = vector.load %arg4[%c0_7, %c0_8, %c0_9] : memref<3x8x128xf32, #tpu.memory_space<vmem>>, vector<1x8x128xf32>
    %8 = vector.shape_cast %7 : vector<1x8x128xf32> to vector<8x128xf32>
    %cst_10 = arith.constant dense<0.000000e+00> : vector<16x128xf32>
    %9 = tpu.matmul %6, %8, %cst_10 {dimension_numbers = #tpu.dot_dimension_numbers<[1], [0], [0], [1], [0, 0, 1, 1], [], []>} : vector<16x8xf32>, vector<8x128xf32>, vector<16x128xf32> -> vector<16x128xf32>
    %10 = arith.addf %5, %9 : vector<16x128xf32>
    %11 = vector.extract_strided_slice %4 {offsets = [16, 0], sizes = [16, 8], strides = [1, 1]} : vector<48x8xf32> to vector<16x8xf32>
    %c1 = arith.constant 1 : index
    %c0_11 = arith.constant 0 : index
    %c0_12 = arith.constant 0 : index
    %12 = vector.load %arg4[%c1, %c0_11, %c0_12] : memref<3x8x128xf32, #tpu.memory_space<vmem>>, vector<1x8x128xf32>
    %13 = vector.shape_cast %12 : vector<1x8x128xf32> to vector<8x128xf32>
    %cst_13 = arith.constant dense<0.000000e+00> : vector<16x128xf32>
    %14 = tpu.matmul %11, %13, %cst_13 {dimension_numbers = #tpu.dot_dimension_numbers<[1], [0], [0], [1], [0, 0, 1, 1], [], []>} : vector<16x8xf32>, vector<8x128xf32>, vector<16x128xf32> -> vector<16x128xf32>
    %15 = arith.addf %10, %14 : vector<16x128xf32>
    %16 = vector.extract_strided_slice %4 {offsets = [32, 0], sizes = [16, 8], strides = [1, 1]} : vector<48x8xf32> to vector<16x8xf32>
    %c2 = arith.constant 2 : index
    %c0_14 = arith.constant 0 : index
    %c0_15 = arith.constant 0 : index
    %17 = vector.load %arg4[%c2, %c0_14, %c0_15] : memref<3x8x128xf32, #tpu.memory_space<vmem>>, vector<1x8x128xf32>
    %18 = vector.shape_cast %17 : vector<1x8x128xf32> to vector<8x128xf32>
    %cst_16 = arith.constant dense<0.000000e+00> : vector<16x128xf32>
    %19 = tpu.matmul %16, %18, %cst_16 {dimension_numbers = #tpu.dot_dimension_numbers<[1], [0], [0], [1], [0, 0, 1, 1], [], []>} : vector<16x8xf32>, vector<8x128xf32>, vector<16x128xf32> -> vector<16x128xf32>
    %20 = arith.addf %15, %19 : vector<16x128xf32>
    %c0_17 = arith.constant 0 : index
    %c0_18 = arith.constant 0 : index
    %21 = vector.load %arg5[%c0_17, %c0_18] : memref<1x128xf32, #tpu.memory_space<vmem>>, vector<1x128xf32>
    %22 = vector.shape_cast %21 : vector<1x128xf32> to vector<128xf32>
    %23 = vector.shape_cast %22 : vector<128xf32> to vector<1x128xf32>
    %24 = vector.broadcast %23 : vector<1x128xf32> to vector<16x128xf32>
    %25 = arith.addf %20, %24 : vector<16x128xf32>
    %cst_19 = arith.constant 0.000000e+00 : f32
    %26 = vector.broadcast %cst_19 : f32 to vector<16x128xf32>
    %27 = arith.maximumf %25, %26 : vector<16x128xf32>
    %c0_20 = arith.constant 0 : index
    %c0_21 = arith.constant 0 : index
    %c0_22 = arith.constant 0 : index
    %28 = vector.load %arg6[%c0_20, %c0_21, %c0_22] : memref<1x16x128xf32, #tpu.memory_space<vmem>>, vector<1x16x128xf32>
    %29 = vector.shape_cast %28 : vector<1x16x128xf32> to vector<16x128xf32>
    %30 = vector.shape_cast %27 : vector<16x128xf32> to vector<1x16x128xf32>
    tpu.vector_store %arg6[%c0_20, %c0_21, %c0_22], %30 {strides = array<i32>} : memref<1x16x128xf32, #tpu.memory_space<vmem>>, vector<1x16x128xf32>,
    return
  }
  func.func @transform_0(%arg0: i32, %arg1: i32) -> (i32, i32, i32, i32) {
    %c0_i32 = arith.constant 0 : i32
    %c0_i32_0 = arith.constant 0 : i32
    %c0_i32_1 = arith.constant 0 : i32
    return %arg0, %c0_i32, %arg1, %c0_i32_0 : i32, i32, i32, i32
  }
  func.func @transform_1(%arg0: i32, %arg1: i32) -> (i32, i32, i32) {
    %c0_i32 = arith.constant 0 : i32
    %c0_i32_0 = arith.constant 0 : i32
    %c0_i32_1 = arith.constant 0 : i32
    return %arg0, %c0_i32, %c0_i32_0 : i32, i32, i32
  }
  func.func @transform_2(%arg0: i32, %arg1: i32) -> (i32, i32, i32) {
    %c0_i32 = arith.constant 0 : i32
    %c0_i32_0 = arith.constant 0 : i32
    %c0_i32_1 = arith.constant 0 : i32
    %c0_i32_2 = arith.constant 0 : i32
    return %c0_i32, %c0_i32_0, %c0_i32_1 : i32, i32, i32
  }
  func.func @transform_3(%arg0: i32, %arg1: i32) -> (i32, i32) {
    %c0_i32 = arith.constant 0 : i32
    %c0_i32_0 = arith.constant 0 : i32
    %c0_i32_1 = arith.constant 0 : i32
    return %c0_i32, %c0_i32_0 : i32, i32
  }
  func.func @transform_4(%arg0: i32, %arg1: i32) -> (i32, i32, i32) {
    %c0_i32 = arith.constant 0 : i32
    %c0_i32_0 = arith.constant 0 : i32
    return %arg0, %arg1, %c0_i32 : i32, i32, i32
  }
}

</mosaic_0001>

<bundles_post_ra>
// kernel: tpu_custom_call.1
= control target key start
LH: loop header
LB: loop body
LE: loop exit
PB: predicated region body
PF: predicated region fallthrough
CT: control target
= control target key end

     0   :  { %9 = vsyncpa [#allocation3], 0  ;;  %s1231_s0 = inlined_call_operand.hbm [shape: bf16[2,3,16,16], index: 0, kind: input, shape index: {}]   ;;  %s1232_s1 = inlined_call_operand.vmem [shape: bf16[2,16,8], index: 1, kind: input, shape index: {}]   ;;  %s1233_s2 = inlined_call_operand.vmem [shape: f32[3,8,128], index: 2, kind: input, shape index: {}]   ;;  %s1234_s3 = inlined_call_operand.vmem [shape: f32[1,128], index: 3, kind: input, shape index: {}]   ;;  %s1235_s4 = inlined_call_operand.hbm [shape: f32[2,16,128], index: 4, kind: output, shape index: {}]  }
   0x1   :  { %11 = vsyncpa [#allocation3 + $0x1], 0 }
   0x2   :  { %12 = vsyncpa [#allocation4], 0 }
   0x3   :  { %14 = vsyncpa [#allocation4 + $0x1], 0  ;;  %s1032_s15 = smov 0   ;;  %s1034_s16 = smov 0  }
   0x4   :  { %s1036_s17 = smov 0   ;;  %s1038_s18 = smov 0  }
   0x5   :  { %s1040_s19 = smov 0   ;;  %s1042_s20 = smov 0  }
   0x6 LB: > { %s732_s21 = sadd.s32 4294967295, %s997_s20   ;;  %s733_s22 = sadd.s32 4294967294, %s997_s20   ;;  %s997_s20 = sphi %s1042_s20, %s20_s20   ;;  %s993_s19 = sphi %s1040_s19, %s1250_s19   ;;  %s989_s18 = sphi %s1038_s18, %s1249_s18   ;;  %s985_s17 = sphi %s1036_s17, %s1248_s17   ;;  %s981_s16 = sphi %s1034_s16, %s1247_s16   ;;  %s977_s15 = sphi %s1032_s15, %s1246_s15  }
   0x7   : > { %s32_s23 = sadd.s32 1, %s993_s19  ;;  %s41_s24 = sadd.s32 1, %s985_s17 }
   0x8   : > { %p34_p0 = scmp.ge.s32.totalorder %s32_s23, 2  ;;  %p48_p1 = scmp.ne.s32.totalorder %s985_s17, %s981_s16 }
   0x9   : > { %p49_p2 = scmp.eq.s32.totalorder %s997_s20, 0  ;;  %p54_p3 = scmp.ne.s32.totalorder %s981_s16, %s977_s15 }
   0xa   : > { %s1252_s23 = smov (%p34_p0, %s32_s23), 0  ;;  %p55_p5 = scmp.eq.s32.totalorder %s732_s21, 0 }
   0xb   : > { %p1073_p4 = por %p49_p2, %p48_p1  ;;  %s36_s26 = ssub.s32 %s993_s19, %s1252_s23 }
   0xc   : > { %p148_p6 = scmp.eq.s32.totalorder %s732_s21, 1  ;;  %p39_p7 = scmp.eq.s32.totalorder %s36_s26, 0 }
   0xd   : > { %p1079_p8 = por %p55_p5, %p54_p3  ;;  %p154_p10 = scmp.eq.s32.totalorder %s733_s22, 1 }
   0xe   : > { %p1083_p9 = por %p148_p6, %p48_p1  ;;  %p825_p13 = scmp.lt.s32.totalorder %s997_s20, 2 }
   0xf   : > { %s1088_s29 = scalar_select %p39_p7, %s985_s17, %s41_s24  }
  0x10   : > { %s1239_s28 = scalar_select %p1083_p9, 1, 0 }
  0x11   : > { %p1090_p11 = por %p154_p10, %p54_p3  ;;  %s180_s5 = sand.u32 1, %s985_s17  }
  0x12   : > { %s810_s6 = smul.u32 24, %s180_s5  ;;  %p1100_p0 = pnand %p825_p13, %p1073_p4 }
  0x13   : > { %s1240_s30 = scalar_select %p1090_p11, 1, 0 }
  0x14   : > { %s811_s7 = smul.u32 384, %s993_s19  ;;  %s184_s12 = scalar_lea.vmem [#allocation2], %s810_s6 }
  0x15   : > { %s193_s13 = sshll.u32 %s184_s12, 4  ;;  %s1112_s14 = scalar_lea.sflag [#allocation3], %s180_s5  ;;  %s1109_s13 = int_to_ptr.vmem [resolvable:$true] %s193_s13 }
  0x16   : > { %s1107_s11 = scalar_lea.hbm %s1231_s0, %s811_s7  ;;  %p887_p3 = pneg %p1100_p0 }
  0x17   : > { %s885_s21 = scalar_lea.hbm %s1107_s11, 384  ;;  %s890_s25 = scalar_lea.hbm %s1231_s0, 768 }
  0x18   : > { %p886_p2 = scmp.ne.s32.totalorder %s1107_s11, %s885_s21  ;;  %p891_p6 = scmp.lt.u32.totalorder %s1107_s11, %s1231_s0 }
  0x19   : > { %p892_p7 = scmp.lt.u32.totalorder %s890_s25, %s885_s21  ;;  %p894_p13 = scmp.lt.u32.totalorder %s885_s21, %s1107_s11 }
  0x1a   : > { %p888_p4 = pnand %p887_p3, %p886_p2 }
  0x1b   : > { %p893_p10 = por %p892_p7, %p891_p6 }
  0x1c   : > { %p889_p5 = pneg %p888_p4 }
  0x1d   : > { %p895_p12 = por %p894_p13, %p893_p10 }
  0x1f   : > { %p896_p1 = pnand %p895_p12, %p889_p5 }
  0x21   : > { %899 = shalt.err (!%p896_p1)
}
  0x22   : > { %s900_s5 = scalar_lea.vmem %s1109_s13, 384  ;;  %s999_s7 = smov [#allocation2]  }
  0x23   : > { %p901_p2 = scmp.ne.s32.totalorder %s1109_s13, %s900_s5  ;;  %s905_s9 = sshll.u32 %s999_s7, 4  ;;  %s906_s9 = int_to_ptr.vmem [resolvable:$false] %s905_s9 }
  0x24   : > { %s907_s10 = scalar_lea.vmem %s906_s9, 768  ;;  %p908_p9 = scmp.lt.s32.totalorder %s1109_s13, %s906_s9 }
  0x25   : > { %p903_p4 = pnand %p901_p2, %p887_p3  ;;  %p909_p6 = scmp.lt.s32.totalorder %s907_s10, %s900_s5 }
  0x27   : > { %p904_p11 = pneg %p903_p4  ;;  %p910_p7 = por %p909_p6, %p908_p9 }
  0x29   : > { %p911_p10 = pnand %p910_p7, %p904_p11 }
  0x2b   : > { %914 = shalt.err (!%p911_p10)
}
  0x2c   : > { %s1000_s12 = smov 64   ;;  %s1001_s21 = smov 4  }
  0x2d   : > { %820 = dma.hbm_to_vmem [thread:$0]  (!%p1100_p0), %s1107_s11, 384, %s1109_s13, %s1112_s14, %s1000_s12, %s1000_s12, %s1001_s21  }
  0x2e   : > { %p209_p12 = scmp.lt.s32.totalorder %s997_s20, 3  ;;  %p1242_p1 = scmp.ge.s32.totalorder %s997_s20, 1 }
  0x30   : > { %p210_p3 = pnand %p1242_p1, %p209_p12 }
  0x31   : > { %s1144_s22 = sand.u32 (!%p210_p3), 1, %s981_s16  }
  0x32   : > { %213 = sbr.rel (%p210_p3) target bundleno = 538 (0x21a), region = 36  ;;  %s216_s25 = scalar_lea.sflag (!%p210_p3), [#allocation3], %s1144_s22 }
  0x33   : > { %s812_s24 = smul.u32 (!%p210_p3), 24, %s1144_s22 }
  0x35   : > { %s219_s26 = scalar_lea.vmem (!%p210_p3), [#allocation2], %s812_s24 }
  0x39   : > { %968 = dma.done.wait (%p1079_p8), %s216_s25, 384  }
  0x3a   : > { %970 = vsyncadd (%p1079_p8), %s216_s25, 4294966912  ;;  %p250_p9 = scmp.lt.s32.totalorder %s989_s18, 1  ;;  %v1002_v0 = vmov 0.0   ;;  %vm1003_vm0 = vmmov 0   ;;  %v882_v2 = vld [vmem:[%s219_s26] sm:$0xff]   ;;  %vm286_vm1 = vcmask 130048  }
  0x3b   : > { %777 = vmatprep.subr.bf16.mxu0 %v1002_v0  ;;  %779 = vmatprep.mubr.msk.bf16.mxu0 %vm1003_vm0, %v1002_v0  ;;  %v883_v3 = vld [vmem:[%s219_s26 + $0x8] sm:$0xff]   ;;  %v884_v4 = vld [vmem:[%s219_s26 + $0x10] sm:$0xff]   ;;  %vm356_vm2 = vcmask 64512   ;;  %s738_s21 = sshll.u32 %s1144_s22, 4  ;;  %s618_s27 = scalar_lea.sflag [#allocation4], %s1144_s22 }
  0x3c   : > { %s251_s8 = scalar_select %p250_p9, %s989_s18, 1  ;;  %v748_v5 = vld [vmem:[%s1233_s2 + $0x8] sm:$0xff]  ;;  %v353_v6 = vld [vmem:[%s1233_s2] sm:$0xff]  ;;  %v753_v14 = vld [vmem:[%s1233_s2 + $0x10] sm:$0xff] }
  0x3d   : > { %791 = vmatprep.subr.mxu1 %v748_v5  ;;  %v756_v20 = vld [vmem:[%s1234_s3] ss:$0 sm:$0xff]  ;;  %s248_s26 = scalar_lea.vmem [#allocation5], %s738_s21  ;;  %p1243_p11 = scmp.ne.s32.totalorder %s1239_s28, 0 }
  0x3e   : > { %s762_s11 = sshll.u32 %s251_s8, 3  ;;  %792 = vmatpush3.msra.mxu1 %v748_v5  ;;  %s633_s8 = sshll.u32 %s248_s26, 4  ;;  %s1177_s8 = int_to_ptr.vmem [resolvable:$true] %s633_s8 }
  0x3f   : > { %s254_s6 = scalar_lea.vmem %s1232_s1, %s762_s11  ;;  %796 = vmatprep.subr.mxu1 %v353_v6  ;;  %s763_s11 = sshll.u32 %s989_s18, 8 }
  0x40   : > { %v881_v1 = vld [vmem:[%s254_s6] sm:$0xff]   ;;  %s1182_s6 = scalar_lea.hbm %s1235_s4, %s763_s11  ;;  %s915_s5 = scalar_lea.vmem %s1177_s8, 256 }
  0x41   : > { %778 = vmatpush3.bf16.msra.mxu0 %v881_v1  ;;  %p916_p8 = scmp.ne.s32.totalorder %s1177_s8, %s915_s5  ;;  %s1004_s18 = smov [#allocation5]  }
  0x42   : > { %s919_s7 = sshll.u32 %s1004_s18, 4  ;;  %s920_s7 = int_to_ptr.vmem [resolvable:$false] %s919_s7 }
  0x43   : > { %p917_p0 = pnand %p916_p8, %p1243_p11  ;;  %s921_s9 = scalar_lea.vmem %s920_s7, 512 }
  0x44   : > { %780 = vmatmul.mubr.msk.bf16.vlgmr.msra.gmra.mrb[0].mxu0 %vm286_vm1, %v882_v2  ;;  %p922_p13 = scmp.lt.s32.totalorder %s1177_s8, %s920_s7  ;;  %p923_p2 = scmp.lt.s32.totalorder %s921_s9, %s915_s5 }
  0x45   : > { %783 = vmatprep.mubr.msk.bf16.mxu0 %vm1003_vm0, %v1002_v0  ;;  %p918_p5 = pneg %p917_p0 }
  0x46   : > { %p924_p4 = por %p923_p2, %p922_p13 }
  0x48   : > { %p925_p6 = pnand %p924_p4, %p918_p5 }
  0x4c   : > { %784 = vmatmul.mubr.msk.bf16.gmra.mrb[4].mxu0 %vm286_vm1, %v883_v3 }
  0x4d   : > { %787 = vmatprep.mubr.msk.bf16.mxu0 %vm1003_vm0, %v1002_v0 }
  0x54   : > { %788 = vmatmul.mubr.msk.bf16.gmra.mrb[8].mxu0 %vm286_vm1, %v884_v4 }
 0x117   : > { %v330_v7 = vpop.f32.mrb[0].mxu0 }
 0x118   : > { %v781_v8 = vpop.f32.mrb[1].mxu0 }
 0x119   : > { %v333_v9 = vpop.f32.mrb[2].mxu0 }
 0x11a   : > { %v782_v10 = vpop.f32.mrb[3].mxu0 }
 0x11f   : > { %v338_v11 = vpop.f32.mrb[4].mxu0 }
 0x120   : > { %v785_v12 = vpop.f32.mrb[5].mxu0  ;;  %793 = vmatprep.mubr.msk.f32.mxu1 %vm356_vm2, %v338_v11 }
 0x121   : > { %v341_v13 = vpop.f32.mrb[6].mxu0 }
 0x122   : > { %v786_v15 = vpop.f32.mrb[7].mxu0  ;;  %794 = vmatmul.mubr.msk.f32.vlgmr.msra.gmra.mrb[0].mxu1 %vm356_vm2, %v341_v13 }
 0x123   : > { %797 = vmatpush3.msra.mxu1 %v353_v6  ;;  %798 = vmatprep.mubr.msk.f32.mxu1 %vm356_vm2, %v330_v7 }
 0x124   : > { %801 = vmatprep.subr.mxu1 %v753_v14 }
 0x127   : > { %v346_v16 = vpop.f32.mrb[8].mxu0 }
 0x128   : > { %v789_v17 = vpop.f32.mrb[9].mxu0 }
 0x129   : > { %v349_v18 = vpop.f32.mrb[10].mxu0 }
 0x12a   : > { %799 = vmatmul.mubr.msk.f32.vlgmr.msra.gmra.mrb[0].mxu1 %vm356_vm2, %v333_v9  ;;  %v790_v19 = vpop.f32.mrb[11].mxu0 }
 0x12b   : > { %802 = vmatpush3.msra.mxu1 %v753_v14  ;;  %803 = vmatprep.mubr.msk.f32.mxu1 %vm356_vm2, %v346_v16 }
 0x132   : > { %804 = vmatmul.mubr.msk.f32.vlgmr.msra.gmra.mrb[0].mxu1 %vm356_vm2, %v349_v18 }
 0x205   : > { %v805_v21 = vpop.f32.mrb[0].mxu1 }
 0x206   : > { %v612_v22 = vadd.f32 %v805_v21, %v756_v20  ;;  %v593_v23 = vpop.f32.mrb[1].mxu1 }
 0x207   : > { %v611_v24 = vadd.f32 %v756_v20, %v593_v23 }
 0x208   : > { %v614_v25 = vmax.f32 %v612_v22, 0.0 }
 0x209   : > { %v613_v26 = vmax.f32 %v611_v24, 0.0 }
 0x20a   : > { %616 = vst [vmem:[%s248_s26 + $0x8] sm:$0xff] %v614_v25 }
 0x20b   : > { %615 = vst [vmem:[%s248_s26] sm:$0xff] %v613_v26 }
 0x20c   : > { %928 = shalt.err (!%p925_p6)
}
 0x20d   : > { %s929_s10 = scalar_lea.hbm %s1182_s6, 256  ;;  %s933_s24 = scalar_lea.hbm %s1235_s4, 512 }
 0x20e   : > { %p930_p7 = scmp.ne.s32.totalorder %s1182_s6, %s929_s10  ;;  %p934_p1 = scmp.lt.u32.totalorder %s1182_s6, %s1235_s4 }
 0x20f   : > { %p935_p3 = scmp.lt.u32.totalorder %s933_s24, %s929_s10  ;;  %p937_p8 = scmp.lt.u32.totalorder %s929_s10, %s1182_s6 }
 0x210   : > { %p931_p10 = pnand %p930_p7, %p1243_p11 }
 0x211   : > { %p936_p9 = por %p935_p3, %p934_p1 }
 0x212   : > { %p932_p12 = pneg %p931_p10 }
 0x213   : > { %p938_p0 = por %p937_p8, %p936_p9 }
 0x215   : > { %p939_p5 = pnand %p938_p0, %p932_p12 }
 0x217   : > { %942 = shalt.err (!%p939_p5)
}
 0x218   : > { %s1005_s11 = smov 128   ;;  %s1006_s13 = smov 8  }
 0x219   : > { %815 = dma.vmem_to_hbm [thread:$0]  (%p1243_p11), %s1177_s8, 256, %s1182_s6, %s618_s27, %s1005_s11, %s1005_s11, %s1006_s13  }
 0x21a PF: > { %s648_s14 = sand.u32 1, %s977_s15   ;;  %p1244_p13 = scmp.ne.s32.totalorder %s1240_s30, 0 }
 0x21b   : > { %p1245_p2 = scmp.ge.s32.totalorder %s997_s20, 2  ;;  %s649_s5 = scalar_lea.sflag [#allocation4], %s648_s14 }
 0x21d   : > { %p822_p4 = pnand %p1245_p2, %p1244_p13 }
 0x21f   : > { %972 = dma.done.wait (!%p822_p4), %s649_s5, 256  }
 0x220   : > { %974 = vsyncadd (!%p822_p4), %s649_s5, 4294967040  ;;  %s20_s20 = sadd.s32 1, %s997_s20   ;;  %s1246_s15 = smov %s981_s16 }
 0x221   : > { %p17_p6 = scmp.ge.s32.totalorder %s20_s20, 4   ;;  %s1247_s16 = smov %s985_s17 }
 0x222   : > { %s1248_s17 = smov %s1088_s29  ;;  %s1249_s18 = smov %s993_s19 }
 0x223   : > { %s1250_s19 = smov %s1252_s23  ;;  %19 = sbr.rel (!%p17_p6) target bundleno = 6 (0x6), region = 86 }
 0x22a   :  { %654 = vsyncpa [#allocation3], 1 }
 0x22b   :  { %656 = vsyncpa [#allocation3 + $0x1], 1 }
 0x22c   :  { %657 = vsyncpa [#allocation4], 1 }
 0x22d   :  { %659 = vsyncpa [#allocation4 + $0x1], 1 }

</bundles_post_ra>
